<compile_context>
chip_gen: v7x
topology: tpu7x:2x2x1
jax: 0.10.0
libtpu: 0.0.40
codegen_flags: <defaults>
</compile_context>

<pallas_src>
import functools

import numpy as np
import jax
import jax.numpy as jnp
from jax.experimental import pallas as pl
from jax.experimental.pallas import tpu as pltpu


def _round_up(x, m):
    return (x + m - 1) // m * m


def ffn_kernel(x_ref, win_ref, bin_ref, wout_ref, bout_ref, o_ref,
               *, compute_dtype):
    # Block shapes: x (TM, H); w_in (H, F); b_in (1, F); w_out (F, H);
    #               b_out (1, H); out (TM, H).
    x = x_ref[...]
    w_in = win_ref[...]
    w_out = wout_ref[...]
    if compute_dtype != jnp.float32:
        x = x.astype(compute_dtype)
        w_in = w_in.astype(compute_dtype)
        w_out = w_out.astype(compute_dtype)

    h = jnp.dot(x, w_in, preferred_element_type=jnp.float32) + bin_ref[...]
    h = jnp.maximum(h, 0.0)                      # ReLU on the VPU
    if compute_dtype != jnp.float32:
        h = h.astype(compute_dtype)

    y = jnp.dot(h, w_out, preferred_element_type=jnp.float32) + bout_ref[...]
    o_ref[...] = y.astype(o_ref.dtype)


def position_wise_feed_forward(h_V, w_in, b_in, w_out, b_out,
                               *, block_rows=256, use_bf16_matmul=False):
    """y = relu(h_V @ w_in + b_in) @ w_out + b_out.

    h_V : (..., H) float32
    w_in : (H, F)   -- pre-transposed torch weight (torch stores (F, H))
    b_in : (F,)
    w_out: (F, H)   -- pre-transposed torch weight (torch stores (H, F))
    b_out: (H,)
    """
    orig_shape = h_V.shape
    H = orig_shape[-1]
    F = w_in.shape[1]

    # Flatten every leading dim into one big row axis -> large M per MXU call.
    x2 = h_V.reshape(-1, H)
    M = x2.shape[0]

    tm = min(block_rows, _round_up(M, 8))        # row tile, multiple of 8
    Mp = _round_up(M, tm)
    if Mp != M:
        x2 = jnp.pad(x2, ((0, Mp - M), (0, 0)))

    b_in2 = b_in.reshape(1, F)
    b_out2 = b_out.reshape(1, H)

    kernel = functools.partial(
        ffn_kernel,
        compute_dtype=jnp.bfloat16 if use_bf16_matmul else jnp.float32)

    out = pl.pallas_call(
        kernel,
        out_shape=jax.ShapeDtypeStruct((Mp, H), h_V.dtype),
        grid=(Mp // tm,),
        in_specs=[
            pl.BlockSpec((tm, H), lambda i: (i, 0)),   # activations: tiled rows
            pl.BlockSpec((H, F), lambda i: (0, 0)),    # W_in: resident
            pl.BlockSpec((1, F), lambda i: (0, 0)),    # b_in: resident
            pl.BlockSpec((F, H), lambda i: (0, 0)),    # W_out: resident
            pl.BlockSpec((1, H), lambda i: (0, 0)),    # b_out: resident
        ],
        out_specs=pl.BlockSpec((tm, H), lambda i: (i, 0)),
        compiler_params=pltpu.CompilerParams(
            # Row tiles are independent -> shard across TensorCores on v7x.
            dimension_semantics=("parallel",)),
    )(x2, w_in, b_in2, w_out, b_out2)

    return out[:M].reshape(orig_shape)


def reference_forward(h_V, w_in, b_in, w_out, b_out):
    """Pure-JAX reference mirroring the PyTorch forward."""
    h = jax.nn.relu(jnp.einsum("...h,hf->...f", h_V, w_in) + b_in)
    return jnp.einsum("...f,fh->...h", h, w_out) + b_out


if __name__ == "__main__":
    # h_V in the graph transformer is (batch, nodes, dim_hidden); dim_ff = 4*H.
    B, N, H = 2, 16, 32
    F = 4 * H

    key = jax.random.PRNGKey(0)
    k_x, k_wi, k_bi, k_wo, k_bo = jax.random.split(key, 5)

    h_V = jax.random.normal(k_x, (B, N, H), jnp.float32)
    w_in = 0.1 * jax.random.normal(k_wi, (H, F), jnp.float32)
    b_in = 0.1 * jax.random.normal(k_bi, (F,), jnp.float32)
    w_out = 0.1 * jax.random.normal(k_wo, (F, H), jnp.float32)
    b_out = 0.1 * jax.random.normal(k_bo, (H,), jnp.float32)

    out = position_wise_feed_forward(h_V, w_in, b_in, w_out, b_out)
    out = jax.block_until_ready(out)

    ref = reference_forward(h_V, w_in, b_in, w_out, b_out)
    np.testing.assert_allclose(np.asarray(out), np.asarray(ref),
                               rtol=1e-4, atol=1e-4)
    print("KERNEL_OK")
</pallas_src>

<mosaic_0001>
module attributes {stable_mosaic.version = 11 : i64} {
  func.func @ffn_kernel(%arg0: i32, %arg1: memref<32x32xf32, #tpu.memory_space<vmem>>, %arg2: memref<32x128xf32, #tpu.memory_space<vmem>>, %arg3: memref<1x128xf32, #tpu.memory_space<vmem>>, %arg4: memref<128x32xf32, #tpu.memory_space<vmem>>, %arg5: memref<1x32xf32, #tpu.memory_space<vmem>>, %arg6: memref<32x32xf32, #tpu.memory_space<vmem>>) attributes {dimension_semantics = [#tpu.dimension_semantics<parallel>], iteration_bounds = array<i64: 1>, scalar_prefetch = 0 : i64, scratch_operands = 0 : i64, tpu.core_type = #tpu.core_type<tc>, window_params = [{transform_indices = @transform_0, window_bounds = array<i64: 32, 32>}, {pipeline_mode = #tpu.pipeline_mode<synchronous>, transform_indices = @transform_1, window_bounds = array<i64: 32, 128>}, {pipeline_mode = #tpu.pipeline_mode<synchronous>, transform_indices = @transform_2, window_bounds = array<i64: 1, 128>}, {pipeline_mode = #tpu.pipeline_mode<synchronous>, transform_indices = @transform_3, window_bounds = array<i64: 128, 32>}, {pipeline_mode = #tpu.pipeline_mode<synchronous>, transform_indices = @transform_4, window_bounds = array<i64: 1, 32>}, {transform_indices = @transform_5, window_bounds = array<i64: 32, 32>}]} {
    %c0 = arith.constant 0 : index
    %c0_0 = arith.constant 0 : index
    %0 = vector.load %arg1[%c0, %c0_0] : memref<32x32xf32, #tpu.memory_space<vmem>>, vector<32x32xf32>
    %c0_1 = arith.constant 0 : index
    %c0_2 = arith.constant 0 : index
    %1 = vector.load %arg2[%c0_1, %c0_2] : memref<32x128xf32, #tpu.memory_space<vmem>>, vector<32x128xf32>
    %c0_3 = arith.constant 0 : index
    %c0_4 = arith.constant 0 : index
    %2 = vector.load %arg4[%c0_3, %c0_4] : memref<128x32xf32, #tpu.memory_space<vmem>>, vector<128x32xf32>
    %cst = arith.constant dense<0.000000e+00> : vector<32x128xf32>
    %3 = tpu.matmul %0, %1, %cst {dimension_numbers = #tpu.dot_dimension_numbers<[1], [0], [0], [1], [0, 0, 1, 1], [], []>} : vector<32x32xf32>, vector<32x128xf32>, vector<32x128xf32> -> vector<32x128xf32>
    %c0_5 = arith.constant 0 : index
    %c0_6 = arith.constant 0 : index
    %4 = vector.load %arg3[%c0_5, %c0_6] : memref<1x128xf32, #tpu.memory_space<vmem>>, vector<1x128xf32>
    %5 = vector.broadcast %4 : vector<1x128xf32> to vector<32x128xf32>
    %6 = arith.addf %3, %5 : vector<32x128xf32>
    %cst_7 = arith.constant 0.000000e+00 : f32
    %7 = vector.broadcast %cst_7 : f32 to vector<32x128xf32>
    %8 = arith.maximumf %6, %7 : vector<32x128xf32>
    %cst_8 = arith.constant dense<0.000000e+00> : vector<32x32xf32>
    %9 = tpu.matmul %8, %2, %cst_8 {dimension_numbers = #tpu.dot_dimension_numbers<[1], [0], [0], [1], [0, 0, 1, 1], [], []>} : vector<32x128xf32>, vector<128x32xf32>, vector<32x32xf32> -> vector<32x32xf32>
    %c0_9 = arith.constant 0 : index
    %c0_10 = arith.constant 0 : index
    %10 = vector.load %arg5[%c0_9, %c0_10] : memref<1x32xf32, #tpu.memory_space<vmem>>, vector<1x32xf32>
    %11 = vector.broadcast %10 : vector<1x32xf32> to vector<32x32xf32>
    %12 = arith.addf %9, %11 : vector<32x32xf32>
    %c0_11 = arith.constant 0 : index
    %c0_12 = arith.constant 0 : index
    %13 = vector.load %arg6[%c0_11, %c0_12] : memref<32x32xf32, #tpu.memory_space<vmem>>, vector<32x32xf32>
    tpu.vector_store %arg6[%c0_11, %c0_12], %12 {strides = array<i32>} : memref<32x32xf32, #tpu.memory_space<vmem>>, vector<32x32xf32>,
    return
  }
  func.func @transform_0(%arg0: i32) -> (i32, i32) {
    %c0_i32 = arith.constant 0 : i32
    %c0_i32_0 = arith.constant 0 : i32
    return %arg0, %c0_i32 : i32, i32
  }
  func.func @transform_1(%arg0: i32) -> (i32, i32) {
    %c0_i32 = arith.constant 0 : i32
    %c0_i32_0 = arith.constant 0 : i32
    %c0_i32_1 = arith.constant 0 : i32
    return %c0_i32, %c0_i32_0 : i32, i32
  }
  func.func @transform_2(%arg0: i32) -> (i32, i32) {
    %c0_i32 = arith.constant 0 : i32
    %c0_i32_0 = arith.constant 0 : i32
    %c0_i32_1 = arith.constant 0 : i32
    return %c0_i32, %c0_i32_0 : i32, i32
  }
  func.func @transform_3(%arg0: i32) -> (i32, i32) {
    %c0_i32 = arith.constant 0 : i32
    %c0_i32_0 = arith.constant 0 : i32
    %c0_i32_1 = arith.constant 0 : i32
    return %c0_i32, %c0_i32_0 : i32, i32
  }
  func.func @transform_4(%arg0: i32) -> (i32, i32) {
    %c0_i32 = arith.constant 0 : i32
    %c0_i32_0 = arith.constant 0 : i32
    %c0_i32_1 = arith.constant 0 : i32
    return %c0_i32, %c0_i32_0 : i32, i32
  }
  func.func @transform_5(%arg0: i32) -> (i32, i32) {
    %c0_i32 = arith.constant 0 : i32
    %c0_i32_0 = arith.constant 0 : i32
    return %arg0, %c0_i32 : i32, i32
  }
}

</mosaic_0001>

<bundles_post_ra>
// kernel: tpu_custom_call.1
= control target key start
LH: loop header
LB: loop body
LE: loop exit
PB: predicated region body
PF: predicated region fallthrough
CT: control target
= control target key end

     0   :  { %vm52_vm0 = vcmask 261120   ;;  %s550_s0 = inlined_call_operand.vmem [shape: f32[32,32], index: 0, kind: input, shape index: {}]   ;;  %s551_s1 = inlined_call_operand.vmem [shape: f32[32,128], index: 1, kind: input, shape index: {}]   ;;  %s552_s2 = inlined_call_operand.vmem [shape: f32[1,128], index: 2, kind: input, shape index: {}]   ;;  %s553_s3 = inlined_call_operand.vmem [shape: f32[128,32], index: 3, kind: input, shape index: {}]   ;;  %s554_s4 = inlined_call_operand.vmem [shape: f32[1,32], index: 4, kind: input, shape index: {}]   ;;  %s555_s5 = inlined_call_operand.hbm [shape: f32[32,32], index: 5, kind: output, shape index: {}]  }
   0x1   :  { %v25_v0 = vld [vmem:[%s551_s1] sm:$0xff]  ;;  %v26_v1 = vld [vmem:[%s551_s1 + $0x8] sm:$0xff]  ;;  %v27_v2 = vld [vmem:[%s551_s1 + $0x10] sm:$0xff] }
   0x2   :  { %v352_v3 = vpack.c.bf16 %v26_v1, %v25_v0  ;;  %v28_v4 = vld [vmem:[%s551_s1 + $0x18] sm:$0xff]  ;;  %v21_v5 = vld [vmem:[%s550_s0] sm:$0xff]  ;;  %v30_v8 = vld [vmem:[%s553_s3 + $0x8] sm:$0xff] }
   0x3   :  { %v356_v6 = vpack.c.bf16 %v28_v4, %v27_v2  ;;  %308 = vmatprep.mubr.msk.f32.mxu0 %vm52_vm0, %v21_v5  ;;  %v29_v7 = vld [vmem:[%s553_s3] sm:$0xff]  ;;  %v31_v9 = vld [vmem:[%s553_s3 + $0x10] sm:$0xff]  ;;  %v32_v10 = vld [vmem:[%s553_s3 + $0x18] sm:$0xff] }
   0x4   :  { %353 = vmatprep.subr.bf16.mxu0 %v352_v3  ;;  %v360_v11 = vpack.c.bf16 %v30_v8, %v29_v7  ;;  %v364_v12 = vpack.c.bf16 %v32_v10, %v31_v9  ;;  %v33_v13 = vld [vmem:[%s553_s3 + $0x20] sm:$0xff]  ;;  %v34_v14 = vld [vmem:[%s553_s3 + $0x28] sm:$0xff] }
   0x5   :  { %355 = vmatpush3.bf16.msra.mxu0 %v352_v3 }
   0x6   :  { %357 = vmatprep.subr.bf16.mxu0 %v356_v6  ;;  %361 = vmatprep.subr.bf16.mxu1 %v360_v11 }
   0x7   :  { %363 = vmatpush3.bf16.msra.mxu1 %v360_v11 }
   0x8   :  { %10 = vsyncpa [#allocation3], 0  ;;  %v22_v15 = vld [vmem:[%s550_s0 + $0x8] sm:$0xff]  ;;  %365 = vmatprep.subr.bf16.mxu1 %v364_v12  ;;  %v368_v16 = vpack.c.bf16 %v34_v14, %v33_v13  ;;  %v23_v17 = vld [vmem:[%s550_s0 + $0x10] sm:$0xff] }
   0x9   :  { %359 = vmatpush3.bf16.msra.mxu0 %v356_v6  ;;  %v35_v18 = vld [vmem:[%s553_s3 + $0x30] sm:$0xff]  ;;  %v36_v19 = vld [vmem:[%s553_s3 + $0x38] sm:$0xff]  ;;  %v37_v22 = vld [vmem:[%s553_s3 + $0x40] sm:$0xff] }
   0xa   :  { %v24_v20 = vld [vmem:[%s550_s0 + $0x18] sm:$0xff]  ;;  %v372_v21 = vpack.c.bf16 %v36_v19, %v35_v18  ;;  %v38_v23 = vld [vmem:[%s553_s3 + $0x48] sm:$0xff]  ;;  %v39_v25 = vld [vmem:[%s553_s3 + $0x50] sm:$0xff] }
   0xb   :  { %367 = vmatpush3.bf16.msra.mxu1 %v364_v12  ;;  %v376_v24 = vpack.c.bf16 %v38_v23, %v37_v22  ;;  %v40_v26 = vld [vmem:[%s553_s3 + $0x58] sm:$0xff]  ;;  %v41_v28 = vld [vmem:[%s553_s3 + $0x60] sm:$0xff]  ;;  %v42_v29 = vld [vmem:[%s553_s3 + $0x68] sm:$0xff] }
   0xc   :  { %309 = vmatmul.mubr.msk.f32.vlgmr.msra.gmra.mrb[0].mxu0 %vm52_vm0, %v22_v15  ;;  %369 = vmatprep.subr.bf16.mxu1 %v368_v16  ;;  %v380_v27 = vpack.c.bf16 %v40_v26, %v39_v25  ;;  %v384_v30 = vpack.c.bf16 %v42_v29, %v41_v28  ;;  %v43_v31 = vld [vmem:[%s553_s3 + $0x70] sm:$0xff]  ;;  %v44_v32 = vld [vmem:[%s553_s3 + $0x78] sm:$0xff]  ;;  %v266_v34 = vld [vmem:[%s552_s2] ss:$0 sm:$0xff]  ;;  %s419_s2 = smov [#allocation2]  }
   0xd   :  { %311 = vmatprep.mubr.msk.f32.mxu0 %vm52_vm0, %v23_v17  ;;  %v388_v33 = vpack.c.bf16 %v44_v32, %v43_v31  ;;  %v271_v47 = vld [vmem:[%s554_s4] ss:$0 sm:$0xff]  ;;  %s255_s16 = sshll.u32 %s419_s2, 4  ;;  %s256_s16 = int_to_ptr.vmem [resolvable:$true] %s255_s16 }
   0xe   :  { %s395_s4 = scalar_lea.vmem %s256_s16, 512  ;;  %p400_p1 = scmp.lt.s32.totalorder %s256_s16, %s256_s16 }
   0xf   :  { %371 = vmatpush3.bf16.msra.mxu1 %v368_v16  ;;  %p396_p0 = scmp.ne.s32.totalorder %s256_s16, %s395_s4  ;;  %p401_p2 = scmp.lt.s32.totalorder %s395_s4, %s395_s4 }
  0x10   :  { %312 = vmatmul.mubr.msk.f32.gmra.mrb[2].mxu0 %vm52_vm0, %v24_v20  ;;  %373 = vmatprep.subr.bf16.mxu1 %v372_v21 }
  0x11   :  { %p402_p3 = por %p401_p2, %p400_p1 }
  0x13   :  { %375 = vmatpush3.bf16.msra.mxu1 %v372_v21  ;;  %p403_p4 = pnand %p402_p3, %p396_p0 }
  0x14   :  { %377 = vmatprep.subr.bf16.mxu1 %v376_v24 }
  0x17   :  { %379 = vmatpush3.bf16.msra.mxu1 %v376_v24 }
  0x18   :  { %381 = vmatprep.subr.bf16.mxu1 %v380_v27 }
  0x1b   :  { %383 = vmatpush3.bf16.msra.mxu1 %v380_v27 }
  0x1c   :  { %385 = vmatprep.subr.bf16.mxu1 %v384_v30 }
  0x1f   :  { %387 = vmatpush3.bf16.msra.mxu1 %v384_v30 }
  0x20   :  { %389 = vmatprep.subr.bf16.mxu1 %v388_v33 }
  0x23   :  { %391 = vmatpush3.bf16.msra.mxu1 %v388_v33 }
  0xdf   :  { %v310_v35 = vpop.f32.mrb[0].mxu0 }
  0xe0   :  { %v137_v36 = vadd.f32 %v310_v35, %v266_v34  ;;  %v131_v37 = vpop.f32.mrb[1].mxu0 }
  0xe1   :  { %v132_v38 = vadd.f32 %v266_v34, %v131_v37 }
  0xe2   :  { %v151_v41 = vmax.f32 %v137_v36, 0.0 }
  0xe3   :  { %v313_v39 = vpop.f32.mrb[2].mxu0  ;;  %v150_v40 = vmax.f32 %v132_v38, 0.0 }
  0xe4   :  { %v147_v42 = vadd.f32 %v313_v39, %v266_v34  ;;  %v141_v43 = vpop.f32.mrb[3].mxu0 }
  0xe5   :  { %v142_v44 = vadd.f32 %v266_v34, %v141_v43  ;;  %346 = vmatprep.mubr.f32.mxu1 %v150_v40 }
  0xe6   :  { %347 = vmatmul.mubr.f32.vlgmr.msra.gmra.mrb[0].mxu1 %v151_v41  ;;  %v153_v46 = vmax.f32 %v147_v42, 0.0 }
  0xe7   :  { %v152_v45 = vmax.f32 %v142_v44, 0.0 }
  0xe9   :  { %349 = vmatprep.mubr.f32.mxu1 %v152_v45 }
  0xea   :  { %350 = vmatmul.mubr.f32.gmra.mrb[2].mxu1 %v153_v46 }
 0x1b9   :  { %v348_v48 = vpop.f32.mrb[0].mxu1 }
 0x1ba   :  { %v233_v49 = vadd.f32 %v348_v48, %v271_v47  ;;  %v227_v50 = vpop.f32.mrb[1].mxu1 }
 0x1bb   :  { %v228_v51 = vadd.f32 %v271_v47, %v227_v50 }
 0x1bc   :  { %247 = vst.msk [vmem:[#allocation2 + $0x8] sm:$0xff] %vm52_vm0, %v233_v49 }
 0x1bd   :  { %246 = vst.msk [vmem:[#allocation2] sm:$0xff] %vm52_vm0, %v228_v51  ;;  %v351_v52 = vpop.f32.mrb[2].mxu1 }
 0x1be   :  { %v243_v53 = vadd.f32 %v351_v52, %v271_v47  ;;  %v237_v54 = vpop.f32.mrb[3].mxu1 }
 0x1bf   :  { %v238_v55 = vadd.f32 %v271_v47, %v237_v54 }
 0x1c0   :  { %249 = vst.msk [vmem:[#allocation2 + $0x18] sm:$0xff] %vm52_vm0, %v243_v53 }
 0x1c1   :  { %248 = vst.msk [vmem:[#allocation2 + $0x10] sm:$0xff] %vm52_vm0, %v238_v55 }
 0x1c2   :  { %406 = shalt.err (!%p403_p4)
}
 0x1c3   :  { %s407_s19 = scalar_lea.hbm %s555_s5, 512 }
 0x1c4   :  { %p408_p5 = scmp.ne.s32.totalorder %s555_s5, %s407_s19  ;;  %p411_p6 = scmp.lt.u32.totalorder %s407_s19, %s555_s5 }
 0x1c6   :  { %p413_p7 = pnand %p411_p6, %p408_p5 }
 0x1c8   :  { %416 = shalt.err (!%p413_p7)
}
 0x1c9   :  { %s420_s24 = smov 128   ;;  %s421_s25 = smov 8  }
 0x1ca   :  { %261 = dma.vmem_to_hbm [thread:$0]  %s256_s16, 512, %s555_s5, [#allocation3], %s420_s24, %s420_s24, %s421_s25  }
 0x1cb   :  { %417 = dma.done.wait [#allocation3], 512  }
 0x1cc   :  { %418 = vsyncadd [#allocation3], 4294966784 }
 0x1cd   :  { %265 = vsyncpa [#allocation3], 1 }

</bundles_post_ra>
